<compile_context>
chip_gen: v7x
topology: tpu7x:2x2x1
jax: 0.10.0
libtpu: 0.0.40
codegen_flags: <defaults>
</compile_context>

<pallas_src>
import functools

import jax
import jax.numpy as jnp
import numpy as np
from jax.experimental import pallas as pl
from jax.experimental.pallas import tpu as pltpu

_BN_EPS = 1e-5
_LEAKY_SLOPE = 0.01  # F.leaky_relu default negative_slope
_LANE = 128
_SUBLANE = 8


def _round_up(n, m):
    return ((n + m - 1) // m) * m


def _leaky_relu(x):
    return jnp.where(x > 0, x, _LEAKY_SLOPE * x)


def _pad_to(a, shape):
    pads = [(0, t - s) for s, t in zip(a.shape, shape)]
    if all(p == (0, 0) for p in pads):
        return a
    return jnp.pad(a, pads)


def _network_kernel(x_ref, w1_ref, b1_ref, w2_ref, b2_ref, w3_ref, b3_ref,
                    gamma_ref, beta_ref, o_ref, *, actor, real_batch, matmul_dtype):
    act = (lambda v: jnp.maximum(v, 0.0)) if actor else _leaky_relu

    def matmul(a, w_ref):
        return jnp.dot(a.astype(matmul_dtype), w_ref[...].astype(matmul_dtype),
                       preferred_element_type=jnp.float32)

    x = x_ref[...]

    # fc1 + activation (f32 accumulation on the MXU)
    h1 = act(matmul(x, w1_ref) + b1_ref[...])

    # BatchNorm1d (training mode: biased batch stats over the *real* batch rows).
    bp = h1.shape[0]
    if bp == real_batch:
        mean = jnp.mean(h1, axis=0, keepdims=True)
        centered = h1 - mean
        var = jnp.mean(centered * centered, axis=0, keepdims=True)
    else:
        # Batch was padded to a sublane multiple: mask out the padded rows.
        row = jax.lax.broadcasted_iota(jnp.int32, (bp, 1), 0)
        mask = row < real_batch
        inv_n = 1.0 / float(real_batch)
        mean = jnp.sum(jnp.where(mask, h1, 0.0), axis=0, keepdims=True) * inv_n
        centered = h1 - mean
        var = jnp.sum(jnp.where(mask, centered * centered, 0.0),
                      axis=0, keepdims=True) * inv_n
    scale = jax.lax.rsqrt(var + _BN_EPS) * gamma_ref[...]   # fused scale
    h1 = centered * scale + beta_ref[...]

    # fc2 + activation
    h2 = act(matmul(h1, w2_ref) + b2_ref[...])

    # fc3 + final activation
    h3 = matmul(h2, w3_ref) + b3_ref[...]
    h3 = jnp.tanh(h3) if actor else _leaky_relu(h3)

    o_ref[...] = h3.astype(o_ref.dtype)


def network_forward_batched(x, params, *, actor, matmul_dtype=jnp.bfloat16):
    """x: [n_env, batch, input_dim]  -> [n_env, batch, output_dim].

    One grid step per independent forward pass ("env"); weights are VMEM-resident
    across the grid, x/out blocks are pipelined.
    """
    w1, b1, w2, b2, w3, b3, gamma, beta = params
    n_env, batch, input_dim = x.shape
    hidden_in = w1.shape[1]
    hidden_out = w2.shape[1]
    output_dim = w3.shape[1]

    bp = _round_up(batch, _SUBLANE)
    din_p = _round_up(input_dim, _LANE)
    h1_p = _round_up(hidden_in, _LANE)
    h2_p = _round_up(hidden_out, _LANE)
    dout_p = _round_up(output_dim, _LANE)

    # Lane-dense zero padding (zeros are exact: they add nothing to the matmuls,
    # and padded feature columns stay identically zero through BN/activations).
    x_p = _pad_to(x.astype(jnp.float32), (n_env, bp, din_p))
    w1_p = _pad_to(w1, (din_p, h1_p)).astype(matmul_dtype)
    w2_p = _pad_to(w2, (h1_p, h2_p)).astype(matmul_dtype)
    w3_p = _pad_to(w3, (h2_p, dout_p)).astype(matmul_dtype)
    b1_p = _pad_to(b1, (1, h1_p))
    b2_p = _pad_to(b2, (1, h2_p))
    b3_p = _pad_to(b3, (1, dout_p))
    gamma_p = _pad_to(gamma, (1, h1_p))
    beta_p = _pad_to(beta, (1, h1_p))

    kernel = functools.partial(_network_kernel, actor=actor, real_batch=batch,
                               matmul_dtype=matmul_dtype)

    def resident(shape):
        return pl.BlockSpec(shape, lambda e: (0, 0))

    out_p = pl.pallas_call(
        kernel,
        out_shape=jax.ShapeDtypeStruct((n_env, bp, dout_p), jnp.float32),
        grid=(n_env,),
        in_specs=[
            pl.BlockSpec((pl.Squeezed(), bp, din_p), lambda e: (e, 0, 0)),  # x
            resident((din_p, h1_p)),   # w1
            resident((1, h1_p)),       # b1
            resident((h1_p, h2_p)),    # w2
            resident((1, h2_p)),       # b2
            resident((h2_p, dout_p)),  # w3
            resident((1, dout_p)),     # b3
            resident((1, h1_p)),       # gamma
            resident((1, h1_p)),       # beta
        ],
        out_specs=pl.BlockSpec((pl.Squeezed(), bp, dout_p), lambda e: (e, 0, 0)),
        compiler_params=pltpu.CompilerParams(
            dimension_semantics=("parallel",),
            vmem_limit_bytes=32 * 1024 * 1024,
        ),
    )(x_p, w1_p, b1_p, w2_p, b2_p, w3_p, b3_p, gamma_p, beta_p)

    return out_p[:, :batch, :output_dim]


def network_forward(x, params, *, actor, matmul_dtype=jnp.bfloat16):
    """x: [batch, input_dim] or [n_env, batch, input_dim]."""
    if x.ndim == 2:
        return network_forward_batched(x[None], params, actor=actor,
                                       matmul_dtype=matmul_dtype)[0]
    return network_forward_batched(x, params, actor=actor, matmul_dtype=matmul_dtype)


def init_params(key, input_dim, hidden_in_dim, hidden_out_dim, output_dim):
    """Deterministic parameter init mirroring Network.reset_parameters().

    hidden_init() in the reference uses weight.size()[0] == out_features as
    "fan_in"; that quirk is reproduced. Biases use PyTorch's default Linear bias
    range (1/sqrt(in_features)). Weights are stored transposed ([in, out]).
    """
    k = jax.random.split(key, 6)

    def uniform(k_, shape, lim):
        return jax.random.uniform(k_, shape, jnp.float32, -lim, lim)

    w1 = uniform(k[0], (input_dim, hidden_in_dim), 1.0 / np.sqrt(hidden_in_dim))
    b1 = uniform(k[1], (1, hidden_in_dim), 1.0 / np.sqrt(input_dim))
    w2 = uniform(k[2], (hidden_in_dim, hidden_out_dim), 1.0 / np.sqrt(hidden_out_dim))
    b2 = uniform(k[3], (1, hidden_out_dim), 1.0 / np.sqrt(hidden_in_dim))
    w3 = uniform(k[4], (hidden_out_dim, output_dim), 0.001)
    b3 = uniform(k[5], (1, output_dim), 1.0 / np.sqrt(hidden_out_dim))
    gamma = jnp.ones((1, hidden_in_dim), jnp.float32)
    beta = jnp.zeros((1, hidden_in_dim), jnp.float32)
    return (w1, b1, w2, b2, w3, b3, gamma, beta)


def _reference_forward(x, params, *, actor, matmul_dtype=jnp.float32):
    """Plain-JAX reference (single 2-D batch) for correctness checking."""
    w1, b1, w2, b2, w3, b3, gamma, beta = params
    act = (lambda v: jnp.maximum(v, 0.0)) if actor else _leaky_relu

    def mm(a, w):
        return jnp.dot(a.astype(matmul_dtype), w.astype(matmul_dtype),
                       preferred_element_type=jnp.float32)

    h1 = act(mm(x, w1) + b1)
    mean = jnp.mean(h1, axis=0, keepdims=True)
    var = jnp.mean((h1 - mean) ** 2, axis=0, keepdims=True)
    h1 = (h1 - mean) * jax.lax.rsqrt(var + _BN_EPS) * gamma + beta
    h2 = act(mm(h1, w2) + b2)
    h3 = mm(h2, w3) + b3
    return jnp.tanh(h3) if actor else _leaky_relu(h3)


if __name__ == "__main__":
    batch, input_dim, hidden_in_dim, hidden_out_dim, output_dim = 8, 24, 64, 32, 4
    n_env = 4

    key = jax.random.PRNGKey(0)
    key_x, key_p = jax.random.split(key)
    x_env = jax.random.normal(key_x, (n_env, batch, input_dim), jnp.float32)
    params = init_params(key_p, input_dim, hidden_in_dim, hidden_out_dim, output_dim)

    ok = True
    for actor in (False, True):
        # Env-batched forward: f32 matmuls (tight tol) and bf16 matmuls (loose tol).
        for mdt, atol, rtol in ((jnp.float32, 2e-5, 1e-4), (jnp.bfloat16, 5e-2, 5e-2)):
            out = network_forward(x_env, params, actor=actor, matmul_dtype=mdt)
            out = jax.block_until_ready(out)
            ref = jnp.stack([
                _reference_forward(x_env[e], params, actor=actor, matmul_dtype=mdt)
                for e in range(n_env)
            ])
            if not np.allclose(np.asarray(out), np.asarray(ref), atol=atol, rtol=rtol):
                ok = False

        # Single 2-D forward with a batch that is not a sublane multiple
        # (exercises the masked-BatchNorm path for padded batch rows).
        x_small = x_env[0, :6]
        out2 = network_forward(x_small, params, actor=actor, matmul_dtype=jnp.float32)
        out2 = jax.block_until_ready(out2)
        ref2 = _reference_forward(x_small, params, actor=actor, matmul_dtype=jnp.float32)
        if not np.allclose(np.asarray(out2), np.asarray(ref2), atol=2e-5, rtol=1e-4):
            ok = False

    if ok:
        print("KERNEL_OK")
</pallas_src>

<mosaic_0001>
module attributes {stable_mosaic.version = 11 : i64} {
  func.func @_network_kernel(%arg0: i32, %arg1: memref<1x8x128xf32, #tpu.memory_space<vmem>>, %arg2: memref<128x128xf32, #tpu.memory_space<vmem>>, %arg3: memref<1x128xf32, #tpu.memory_space<vmem>>, %arg4: memref<128x128xf32, #tpu.memory_space<vmem>>, %arg5: memref<1x128xf32, #tpu.memory_space<vmem>>, %arg6: memref<128x128xf32, #tpu.memory_space<vmem>>, %arg7: memref<1x128xf32, #tpu.memory_space<vmem>>, %arg8: memref<1x128xf32, #tpu.memory_space<vmem>>, %arg9: memref<1x128xf32, #tpu.memory_space<vmem>>, %arg10: memref<1x8x128xf32, #tpu.memory_space<vmem>>) attributes {dimension_semantics = [#tpu.dimension_semantics<parallel>], iteration_bounds = array<i64: 4>, scalar_prefetch = 0 : i64, scratch_operands = 0 : i64, tpu.core_type = #tpu.core_type<tc>, window_params = [{transform_indices = @transform_0, window_bounds = array<i64: 1, 8, 128>}, {pipeline_mode = #tpu.pipeline_mode<synchronous>, transform_indices = @transform_1, window_bounds = array<i64: 128, 128>}, {pipeline_mode = #tpu.pipeline_mode<synchronous>, transform_indices = @transform_2, window_bounds = array<i64: 1, 128>}, {pipeline_mode = #tpu.pipeline_mode<synchronous>, transform_indices = @transform_3, window_bounds = array<i64: 128, 128>}, {pipeline_mode = #tpu.pipeline_mode<synchronous>, transform_indices = @transform_4, window_bounds = array<i64: 1, 128>}, {pipeline_mode = #tpu.pipeline_mode<synchronous>, transform_indices = @transform_5, window_bounds = array<i64: 128, 128>}, {pipeline_mode = #tpu.pipeline_mode<synchronous>, transform_indices = @transform_6, window_bounds = array<i64: 1, 128>}, {pipeline_mode = #tpu.pipeline_mode<synchronous>, transform_indices = @transform_7, window_bounds = array<i64: 1, 128>}, {pipeline_mode = #tpu.pipeline_mode<synchronous>, transform_indices = @transform_8, window_bounds = array<i64: 1, 128>}, {transform_indices = @transform_9, window_bounds = array<i64: 1, 8, 128>}]} {
    %c0 = arith.constant 0 : index
    %c0_0 = arith.constant 0 : index
    %c0_1 = arith.constant 0 : index
    %0 = vector.load %arg1[%c0, %c0_0, %c0_1] : memref<1x8x128xf32, #tpu.memory_space<vmem>>, vector<1x8x128xf32>
    %1 = vector.shape_cast %0 : vector<1x8x128xf32> to vector<8x128xf32>
    %c0_2 = arith.constant 0 : index
    %c0_3 = arith.constant 0 : index
    %2 = vector.load %arg2[%c0_2, %c0_3] : memref<128x128xf32, #tpu.memory_space<vmem>>, vector<128x128xf32>
    %cst = arith.constant dense<0.000000e+00> : vector<8x128xf32>
    %3 = tpu.matmul %1, %2, %cst {dimension_numbers = #tpu.dot_dimension_numbers<[1], [0], [0], [1], [0, 0, 1, 1], [], []>} : vector<8x128xf32>, vector<128x128xf32>, vector<8x128xf32> -> vector<8x128xf32>
    %c0_4 = arith.constant 0 : index
    %c0_5 = arith.constant 0 : index
    %4 = vector.load %arg3[%c0_4, %c0_5] : memref<1x128xf32, #tpu.memory_space<vmem>>, vector<1x128xf32>
    %5 = vector.broadcast %4 : vector<1x128xf32> to vector<8x128xf32>
    %6 = arith.addf %3, %5 : vector<8x128xf32>
    %cst_6 = arith.constant 0.000000e+00 : f32
    %7 = vector.broadcast %cst_6 : f32 to vector<8x128xf32>
    %8 = arith.cmpf ogt, %6, %7 : vector<8x128xf32>
    %cst_7 = arith.constant 0.00999999977 : f32
    %9 = vector.broadcast %cst_7 : f32 to vector<8x128xf32>
    %10 = arith.mulf %9, %6 : vector<8x128xf32>
    %11 = arith.select %8, %6, %10 : vector<8x128xi1>, vector<8x128xf32>
    %cst_8 = arith.constant dense<0.000000e+00> : vector<128xf32>
    %12 = vector.multi_reduction <add>, %11, %cst_8 [0] : vector<8x128xf32> to vector<128xf32>
    %13 = vector.shape_cast %12 : vector<128xf32> to vector<1x128xf32>
    %cst_9 = arith.constant 8.000000e+00 : f32
    %14 = vector.broadcast %cst_9 : f32 to vector<1x128xf32>
    %15 = arith.divf %13, %14 : vector<1x128xf32>
    %16 = vector.broadcast %15 : vector<1x128xf32> to vector<8x128xf32>
    %17 = arith.subf %11, %16 : vector<8x128xf32>
    %18 = arith.mulf %17, %17 : vector<8x128xf32>
    %cst_10 = arith.constant dense<0.000000e+00> : vector<128xf32>
    %19 = vector.multi_reduction <add>, %18, %cst_10 [0] : vector<8x128xf32> to vector<128xf32>
    %20 = vector.shape_cast %19 : vector<128xf32> to vector<1x128xf32>
    %cst_11 = arith.constant 8.000000e+00 : f32
    %21 = vector.broadcast %cst_11 : f32 to vector<1x128xf32>
    %22 = arith.divf %20, %21 : vector<1x128xf32>
    %cst_12 = arith.constant 9.99999974E-6 : f32
    %23 = vector.broadcast %cst_12 : f32 to vector<1x128xf32>
    %24 = arith.addf %22, %23 : vector<1x128xf32>
    %25 = math.rsqrt %24 : vector<1x128xf32>
    %c0_13 = arith.constant 0 : index
    %c0_14 = arith.constant 0 : index
    %26 = vector.load %arg8[%c0_13, %c0_14] : memref<1x128xf32, #tpu.memory_space<vmem>>, vector<1x128xf32>
    %27 = arith.mulf %25, %26 : vector<1x128xf32>
    %28 = vector.broadcast %27 : vector<1x128xf32> to vector<8x128xf32>
    %29 = arith.mulf %17, %28 : vector<8x128xf32>
    %c0_15 = arith.constant 0 : index
    %c0_16 = arith.constant 0 : index
    %30 = vector.load %arg9[%c0_15, %c0_16] : memref<1x128xf32, #tpu.memory_space<vmem>>, vector<1x128xf32>
    %31 = vector.broadcast %30 : vector<1x128xf32> to vector<8x128xf32>
    %32 = arith.addf %29, %31 : vector<8x128xf32>
    %c0_17 = arith.constant 0 : index
    %c0_18 = arith.constant 0 : index
    %33 = vector.load %arg4[%c0_17, %c0_18] : memref<128x128xf32, #tpu.memory_space<vmem>>, vector<128x128xf32>
    %cst_19 = arith.constant dense<0.000000e+00> : vector<8x128xf32>
    %34 = tpu.matmul %32, %33, %cst_19 {dimension_numbers = #tpu.dot_dimension_numbers<[1], [0], [0], [1], [0, 0, 1, 1], [], []>} : vector<8x128xf32>, vector<128x128xf32>, vector<8x128xf32> -> vector<8x128xf32>
    %c0_20 = arith.constant 0 : index
    %c0_21 = arith.constant 0 : index
    %35 = vector.load %arg5[%c0_20, %c0_21] : memref<1x128xf32, #tpu.memory_space<vmem>>, vector<1x128xf32>
    %36 = vector.broadcast %35 : vector<1x128xf32> to vector<8x128xf32>
    %37 = arith.addf %34, %36 : vector<8x128xf32>
    %cst_22 = arith.constant 0.000000e+00 : f32
    %38 = vector.broadcast %cst_22 : f32 to vector<8x128xf32>
    %39 = arith.cmpf ogt, %37, %38 : vector<8x128xf32>
    %cst_23 = arith.constant 0.00999999977 : f32
    %40 = vector.broadcast %cst_23 : f32 to vector<8x128xf32>
    %41 = arith.mulf %40, %37 : vector<8x128xf32>
    %42 = arith.select %39, %37, %41 : vector<8x128xi1>, vector<8x128xf32>
    %c0_24 = arith.constant 0 : index
    %c0_25 = arith.constant 0 : index
    %43 = vector.load %arg6[%c0_24, %c0_25] : memref<128x128xf32, #tpu.memory_space<vmem>>, vector<128x128xf32>
    %cst_26 = arith.constant dense<0.000000e+00> : vector<8x128xf32>
    %44 = tpu.matmul %42, %43, %cst_26 {dimension_numbers = #tpu.dot_dimension_numbers<[1], [0], [0], [1], [0, 0, 1, 1], [], []>} : vector<8x128xf32>, vector<128x128xf32>, vector<8x128xf32> -> vector<8x128xf32>
    %c0_27 = arith.constant 0 : index
    %c0_28 = arith.constant 0 : index
    %45 = vector.load %arg7[%c0_27, %c0_28] : memref<1x128xf32, #tpu.memory_space<vmem>>, vector<1x128xf32>
    %46 = vector.broadcast %45 : vector<1x128xf32> to vector<8x128xf32>
    %47 = arith.addf %44, %46 : vector<8x128xf32>
    %cst_29 = arith.constant 0.000000e+00 : f32
    %48 = vector.broadcast %cst_29 : f32 to vector<8x128xf32>
    %49 = arith.cmpf ogt, %47, %48 : vector<8x128xf32>
    %cst_30 = arith.constant 0.00999999977 : f32
    %50 = vector.broadcast %cst_30 : f32 to vector<8x128xf32>
    %51 = arith.mulf %50, %47 : vector<8x128xf32>
    %52 = arith.select %49, %47, %51 : vector<8x128xi1>, vector<8x128xf32>
    %c0_31 = arith.constant 0 : index
    %c0_32 = arith.constant 0 : index
    %c0_33 = arith.constant 0 : index
    %53 = vector.load %arg10[%c0_31, %c0_32, %c0_33] : memref<1x8x128xf32, #tpu.memory_space<vmem>>, vector<1x8x128xf32>
    %54 = vector.shape_cast %53 : vector<1x8x128xf32> to vector<8x128xf32>
    %55 = vector.shape_cast %52 : vector<8x128xf32> to vector<1x8x128xf32>
    tpu.vector_store %arg10[%c0_31, %c0_32, %c0_33], %55 {strides = array<i32>} : memref<1x8x128xf32, #tpu.memory_space<vmem>>, vector<1x8x128xf32>,
    return
  }
  func.func @transform_0(%arg0: i32) -> (i32, i32, i32) {
    %c0_i32 = arith.constant 0 : i32
    %c0_i32_0 = arith.constant 0 : i32
    %c0_i32_1 = arith.constant 0 : i32
    return %arg0, %c0_i32, %c0_i32_0 : i32, i32, i32
  }
  func.func @transform_1(%arg0: i32) -> (i32, i32) {
    %c0_i32 = arith.constant 0 : i32
    %c0_i32_0 = arith.constant 0 : i32
    %c0_i32_1 = arith.constant 0 : i32
    return %c0_i32, %c0_i32_0 : i32, i32
  }
  func.func @transform_2(%arg0: i32) -> (i32, i32) {
    %c0_i32 = arith.constant 0 : i32
    %c0_i32_0 = arith.constant 0 : i32
    %c0_i32_1 = arith.constant 0 : i32
    return %c0_i32, %c0_i32_0 : i32, i32
  }
  func.func @transform_3(%arg0: i32) -> (i32, i32) {
    %c0_i32 = arith.constant 0 : i32
    %c0_i32_0 = arith.constant 0 : i32
    %c0_i32_1 = arith.constant 0 : i32
    return %c0_i32, %c0_i32_0 : i32, i32
  }
  func.func @transform_4(%arg0: i32) -> (i32, i32) {
    %c0_i32 = arith.constant 0 : i32
    %c0_i32_0 = arith.constant 0 : i32
    %c0_i32_1 = arith.constant 0 : i32
    return %c0_i32, %c0_i32_0 : i32, i32
  }
  func.func @transform_5(%arg0: i32) -> (i32, i32) {
    %c0_i32 = arith.constant 0 : i32
    %c0_i32_0 = arith.constant 0 : i32
    %c0_i32_1 = arith.constant 0 : i32
    return %c0_i32, %c0_i32_0 : i32, i32
  }
  func.func @transform_6(%arg0: i32) -> (i32, i32) {
    %c0_i32 = arith.constant 0 : i32
    %c0_i32_0 = arith.constant 0 : i32
    %c0_i32_1 = arith.constant 0 : i32
    return %c0_i32, %c0_i32_0 : i32, i32
  }
  func.func @transform_7(%arg0: i32) -> (i32, i32) {
    %c0_i32 = arith.constant 0 : i32
    %c0_i32_0 = arith.constant 0 : i32
    %c0_i32_1 = arith.constant 0 : i32
    return %c0_i32, %c0_i32_0 : i32, i32
  }
  func.func @transform_8(%arg0: i32) -> (i32, i32) {
    %c0_i32 = arith.constant 0 : i32
    %c0_i32_0 = arith.constant 0 : i32
    %c0_i32_1 = arith.constant 0 : i32
    return %c0_i32, %c0_i32_0 : i32, i32
  }
  func.func @transform_9(%arg0: i32) -> (i32, i32, i32) {
    %c0_i32 = arith.constant 0 : i32
    %c0_i32_0 = arith.constant 0 : i32
    %c0_i32_1 = arith.constant 0 : i32
    return %arg0, %c0_i32, %c0_i32_0 : i32, i32, i32
  }
}

</mosaic_0001>

<bundles_post_ra>
// kernel: tpu_custom_call.1
= control target key start
LH: loop header
LB: loop body
LE: loop exit
PB: predicated region body
PF: predicated region fallthrough
CT: control target
= control target key end

     0   :  { %s1723_s0 = inlined_call_operand.hbm [shape: f32[4,8,128], index: 0, kind: input, shape index: {}]   ;;  %s1724_s1 = inlined_call_operand.hbm [shape: f32[128,128], index: 1, kind: input, shape index: {}]   ;;  %s1725_s2 = inlined_call_operand.vmem [shape: f32[1,128], index: 2, kind: input, shape index: {}]   ;;  %s1726_s3 = inlined_call_operand.hbm [shape: f32[128,128], index: 3, kind: input, shape index: {}]   ;;  %s1727_s4 = inlined_call_operand.vmem [shape: f32[1,128], index: 4, kind: input, shape index: {}]   ;;  %s1728_s5 = inlined_call_operand.hbm [shape: f32[128,128], index: 5, kind: input, shape index: {}]   ;;  %s1729_s6 = inlined_call_operand.vmem [shape: f32[1,128], index: 6, kind: input, shape index: {}]   ;;  %s1730_s7 = inlined_call_operand.vmem [shape: f32[1,128], index: 7, kind: input, shape index: {}]   ;;  %s1731_s8 = inlined_call_operand.vmem [shape: f32[1,128], index: 8, kind: input, shape index: {}]   ;;  %s1732_s9 = inlined_call_operand.hbm [shape: f32[4,8,128], index: 9, kind: output, shape index: {}]  }
   0x1   :  { %1739 = sst [smem:[#allocation17_spill]] %s1732_s9 }
   0x2   :  { %14 = vsyncpa [#allocation3], 0 }
   0x3   :  { %16 = vsyncpa [#allocation3 + $0x1], 0 }
   0x4   :  { %17 = vsyncpa [#allocation6], 0 }
   0x5   :  { %18 = vsyncpa [#allocation9], 0 }
   0x6   :  { %19 = vsyncpa [#allocation4], 0 }
   0x7   :  { %21 = vsyncpa [#allocation4 + $0x1], 0  ;;  %s1413_s30 = smov 0   ;;  %s1415_s10 = smov 0  }
   0x8   :  { %s1417_s11 = smov 0   ;;  %s1419_s12 = smov 0  }
   0x9 LB: > { %1740 = sst [smem:[#allocation15_spill]] %s1339_s30  ;;  %s1434_s13 = sadd.s32 4294967295, %s1351_s12   ;;  %s1351_s12 = sphi %s1419_s12, %s1763_s12   ;;  %s1347_s11 = sphi %s1417_s11, %s1762_s11   ;;  %s1343_s10 = sphi %s1415_s10, %s1761_s10   ;;  %s1339_s30 = sphi %s1413_s30, %s1760_s30  }
   0xa   : > { %s829_s14 = sadd.s32 4294967294, %s1351_s12   ;;  %p47_p0 = scmp.ne.s32.totalorder %s1343_s10, %s1339_s30 }
   0xb   : > { %p1733_p1 = scmp.eq.s32.totalorder %s1434_s13, 0  ;;  %p245_p3 = scmp.eq.s32.totalorder %s829_s14, 3 }
   0xc   : > { %p830_p5 = scmp.ge.s32.totalorder %s1351_s12, 1  ;;  %p252_p7 = scmp.lt.s32.totalorder %s1351_s12, 5 }
   0xd   : > { %p1443_p4 = por %p1733_p1, %p47_p0  ;;  %p1448_p6 = por %p245_p3, %p47_p0 }
   0xe   : > { %p1453_p8 = pnand %p830_p5, %p252_p7  ;;  %s1353_s18 = smov [#allocation5]  }
   0xf   : > { %s1741_s15 = scalar_select %p1443_p4, 1, 0 }
  0x10   : > { %s1742_s16 = scalar_select %p1448_p6, 1, 0 }
  0x11   : > { %s1744_s17 = scalar_select %p1453_p8, 1, 0 }
  0x12   : > { %1743 = sst [smem:[#allocation16_spill]] %s1742_s16  ;;  %s264_s19 = sshll.u32 %s1353_s18, 4  ;;  %s1457_s19 = int_to_ptr.vmem [resolvable:$true] %s264_s19 }
  0x13   : > { %p1095_p9 = pneg %p1453_p8  ;;  %s1354_s21 = smov [#allocation7]  }
  0x14   : > { %s280_s22 = sshll.u32 %s1354_s21, 4  ;;  %s1355_s23 = smov [#allocation8]   ;;  %s1467_s22 = int_to_ptr.vmem [resolvable:$true] %s280_s22 }
  0x15   : > { %p1463_p10 = pnand %p1095_p9, %p1733_p1  ;;  %s1469_s24 = sshll.u32 %s1355_s23, 4  ;;  %s297_s24 = int_to_ptr.vmem [resolvable:$true] %s1469_s24 }
  0x16   : > { %s1163_s27 = scalar_lea.hbm %s1724_s1, 2048 }
  0x17   : > { %p1164_p11 = scmp.ne.s32.totalorder %s1724_s1, %s1163_s27  ;;  %p1479_p12 = pneg %p1463_p10 }
  0x18   : > { %p1170_p3 = scmp.lt.u32.totalorder %s1163_s27, %s1724_s1 }
  0x19   : > { %p1166_p13 = pnand %p1479_p12, %p1164_p11 }
  0x1b   : > { %p1167_p0 = pneg %p1166_p13 }
  0x1d   : > { %p1172_p5 = pnand %p1170_p3, %p1167_p0 }
  0x1f   : > { %1175 = shalt.err (!%p1172_p5)
}
  0x20   : > { %s1176_s23 = scalar_lea.vmem %s1457_s19, 2048  ;;  %p1184_p2 = scmp.lt.s32.totalorder %s1457_s19, %s1457_s19 }
  0x21   : > { %p1177_p7 = scmp.ne.s32.totalorder %s1457_s19, %s1176_s23  ;;  %p1185_p6 = scmp.lt.s32.totalorder %s1176_s23, %s1176_s23 }
  0x23   : > { %p1179_p9 = pnand %p1177_p7, %p1479_p12  ;;  %p1186_p11 = por %p1185_p6, %p1184_p2 }
  0x25   : > { %p1180_p1 = pneg %p1179_p9 }
  0x27   : > { %p1187_p13 = pnand %p1186_p11, %p1180_p1 }
  0x29   : > { %1190 = shalt.err (!%p1187_p13)
}
  0x2a   : > { %s1356_s25 = smov 128   ;;  %s1357_s26 = smov 8  }
  0x2b   : > { %1098 = dma.hbm_to_vmem [thread:$0]  (!%p1463_p10), %s1724_s1, 2048, %s1457_s19, [#allocation6], %s1356_s25, %s1356_s25, %s1357_s26  }
  0x2c   : > { %s1191_s21 = scalar_lea.hbm %s1726_s3, 2048 }
  0x2d   : > { %p1192_p1 = scmp.ne.s32.totalorder %s1726_s3, %s1191_s21  ;;  %p1198_p0 = scmp.lt.u32.totalorder %s1191_s21, %s1726_s3 }
  0x2f   : > { %p1194_p2 = pnand %p1192_p1, %p1479_p12 }
  0x31   : > { %p1195_p6 = pneg %p1194_p2 }
  0x33   : > { %p1200_p3 = pnand %p1198_p0, %p1195_p6 }
  0x35   : > { %1203 = shalt.err (!%p1200_p3)
}
  0x36   : > { %s1204_s19 = scalar_lea.vmem %s1467_s22, 2048  ;;  %p1212_p11 = scmp.lt.s32.totalorder %s1467_s22, %s1467_s22 }
  0x37   : > { %p1205_p5 = scmp.ne.s32.totalorder %s1467_s22, %s1204_s19  ;;  %p1213_p13 = scmp.lt.s32.totalorder %s1204_s19, %s1204_s19 }
  0x39   : > { %p1207_p7 = pnand %p1205_p5, %p1479_p12  ;;  %p1214_p1 = por %p1213_p13, %p1212_p11 }
  0x3b   : > { %p1208_p9 = pneg %p1207_p7 }
  0x3d   : > { %p1215_p2 = pnand %p1214_p1, %p1208_p9 }
  0x3f   : > { %1218 = shalt.err (!%p1215_p2)
}
  0x40   : > { %1101 = dma.hbm_to_vmem [thread:$0]  (!%p1463_p10), %s1726_s3, 2048, %s1467_s22, [#allocation6], %s1356_s25, %s1356_s25, %s1357_s26  }
  0x41   : > { %s1219_s28 = scalar_lea.hbm %s1728_s5, 2048 }
  0x42   : > { %p1220_p6 = scmp.ne.s32.totalorder %s1728_s5, %s1219_s28  ;;  %p1226_p5 = scmp.lt.u32.totalorder %s1219_s28, %s1728_s5 }
  0x44   : > { %p1222_p0 = pnand %p1220_p6, %p1479_p12 }
  0x46   : > { %p1223_p3 = pneg %p1222_p0 }
  0x48   : > { %p1228_p7 = pnand %p1226_p5, %p1223_p3 }
  0x4a   : > { %1231 = shalt.err (!%p1228_p7)
}
  0x4b   : > { %s1232_s19 = scalar_lea.vmem %s297_s24, 2048  ;;  %p1240_p1 = scmp.lt.s32.totalorder %s297_s24, %s297_s24 }
  0x4c   : > { %p1233_p9 = scmp.ne.s32.totalorder %s297_s24, %s1232_s19  ;;  %p1241_p2 = scmp.lt.s32.totalorder %s1232_s19, %s1232_s19 }
  0x4e   : > { %p1235_p11 = pnand %p1233_p9, %p1479_p12  ;;  %p1242_p4 = por %p1241_p2, %p1240_p1 }
  0x50   : > { %p1236_p13 = pneg %p1235_p11 }
  0x52   : > { %p1243_p8 = pnand %p1242_p4, %p1236_p13 }
  0x54   : > { %1246 = shalt.err (!%p1243_p8)
}
  0x55   : > { %1104 = dma.hbm_to_vmem [thread:$0]  (!%p1463_p10), %s1728_s5, 2048, %s297_s24, [#allocation9], %s1356_s25, %s1356_s25, %s1357_s26  }
  0x56   : > { %s1552_s14 = sadd.s32 1, %s1351_s12   ;;  %s34_s30 = sadd.s32 1, %s1347_s11 }
  0x57   : > { %s31_s20 = ssub.s32 %s1351_s12, %s1552_s14  ;;  %p41_p8 = scmp.ne.s32.totalorder %s1347_s11, %s1343_s10 }
  0x58   : > { %p32_p4 = scmp.eq.s32.totalorder %s31_s20, 0  ;;  %p42_p12 = scmp.eq.s32.totalorder %s1351_s12, 0 }
  0x59   : > { %p1116_p6 = scmp.lt.s32.totalorder %s1351_s12, 4  ;;  %p1747_p3 = scmp.eq.s32.totalorder %s1434_s13, 3 }
  0x5a   : > { %s1562_s16 = scalar_select %p32_p4, %s1347_s11, %s34_s30  }
  0x5b   : > { %p43_p0 = por %p42_p12, %p41_p8  ;;  %p1566_p5 = por %p1747_p3, %p41_p8 }
  0x5c   : > { %s319_s28 = sand.u32 1, %s1347_s11   ;;  %s836_s29 = sshll.u32 %s1351_s12, 7 }
  0x5d   : > { %s835_s24 = sshll.u32 %s319_s28, 3  ;;  %s1575_s18 = scalar_lea.hbm %s1723_s0, %s836_s29 }
  0x5e   : > { %s323_s21 = scalar_lea.vmem [#allocation2], %s835_s24  ;;  %p1577_p10 = pnand %p1116_p6, %p43_p0 }
  0x5f   : > { %s330_s23 = sshll.u32 %s323_s21, 4  ;;  %s320_s22 = scalar_lea.sflag [#allocation3], %s319_s28  ;;  %s1581_s23 = int_to_ptr.vmem [resolvable:$true] %s330_s23 }
  0x60   : > { %s1247_s9 = scalar_lea.hbm %s1575_s18, 128  ;;  %p1249_p9 = pneg %p1577_p10 }
  0x61   : > { %p1248_p7 = scmp.ne.s32.totalorder %s1575_s18, %s1247_s9  ;;  %s1252_s29 = scalar_lea.hbm %s1723_s0, 512 }
  0x62   : > { %p1253_p1 = scmp.lt.u32.totalorder %s1575_s18, %s1723_s0  ;;  %p1254_p2 = scmp.lt.u32.totalorder %s1252_s29, %s1247_s9 }
  0x63   : > { %p1250_p11 = pnand %p1249_p9, %p1248_p7  ;;  %p1256_p8 = scmp.lt.u32.totalorder %s1247_s9, %s1575_s18 }
  0x64   : > { %p1255_p4 = por %p1254_p2, %p1253_p1 }
  0x65   : > { %p1251_p13 = pneg %p1250_p11 }
  0x66   : > { %p1257_p12 = por %p1256_p8, %p1255_p4 }
  0x68   : > { %p1258_p6 = pnand %p1257_p12, %p1251_p13 }
  0x6a   : > { %1261 = shalt.err (!%p1258_p6)
}
  0x6b   : > { %s1262_s28 = scalar_lea.vmem %s1581_s23, 128  ;;  %s1358_s26 = smov [#allocation2]  }
  0x6c   : > { %p1263_p0 = scmp.ne.s32.totalorder %s1581_s23, %s1262_s28  ;;  %s1267_s21 = sshll.u32 %s1358_s26, 4  ;;  %s1268_s21 = int_to_ptr.vmem [resolvable:$false] %s1267_s21 }
  0x6d   : > { %s1269_s20 = scalar_lea.vmem %s1268_s21, 256  ;;  %p1270_p11 = scmp.lt.s32.totalorder %s1581_s23, %s1268_s21 }
  0x6e   : > { %p1265_p3 = pnand %p1263_p0, %p1249_p9  ;;  %p1271_p1 = scmp.lt.s32.totalorder %s1269_s20, %s1262_s28 }
  0x70   : > { %p1266_p7 = pneg %p1265_p3  ;;  %p1272_p2 = por %p1271_p1, %p1270_p11 }
  0x72   : > { %p1273_p4 = pnand %p1272_p2, %p1266_p7 }
  0x74   : > { %1276 = shalt.err (!%p1273_p4)
}
  0x75   : > { %1108 = dma.hbm_to_vmem [thread:$0]  (!%p1577_p10), %s1575_s18, 128, %s1581_s23, %s320_s22  }
  0x76   : > { %p1750_p13 = scmp.ne.s32.totalorder %s1744_s17, 0 }
  0x77   : > { %s1611_s9 = sand.u32 (!%p1750_p13), 1, %s1343_s10   ;;  %p1751_p9 = scmp.ne.s32.totalorder (!%p1750_p13), %s1741_s15, 0 }
  0x78   : > { %339 = sbr.rel (%p1750_p13) target bundleno = 888 (0x378), region = 56  ;;  %s838_s30 = sshll.u32 (!%p1750_p13), %s1611_s9, 3 }
  0x79   : > { %s342_s29 = scalar_lea.sflag (!%p1750_p13), [#allocation3], %s1611_s9  ;;  %s1617_s24 = scalar_lea.vmem (!%p1750_p13), [#allocation2], %s838_s30 }
  0x7f   : > { %1322 = dma.done.wait (%p1751_p9), %s342_s29, 128  }
  0x80   : > { %1324 = vsyncadd (%p1751_p9), %s342_s29, 4294967168  ;;  %p1752_p10 = scmp.eq.s32.totalorder %s1434_s13, 0 }
  0x82   : > { %1326 = dma.done.wait (%p1752_p10), [#allocation6], 4096   ;;  %p1753_p8 = pmov %p1752_p10 }
  0x84   : > { %1328 = vsyncadd (%p1753_p8), [#allocation6], 4294963200  ;;  %p1754_p12 = pmov %p1753_p8 }
  0x85   : > { %p1755_p6 = pmov %p1753_p8 }
  0x86   : > { %1330 = dma.done.wait (%p1754_p12), [#allocation9], 2048  }
  0x87   : > { %1332 = vsyncadd (%p1755_p6), [#allocation9], 4294965248  ;;  %v1359_v0 = vmov 0.0|0.0   ;;  %vm1360_vm0 = vmmov 0   ;;  %v1361_v1 = vmov 0.0   ;;  %v393_v2 = vld [vmem:[#allocation5] sm:$0xff] }
  0x88   : > { %1007 = vmatprep.subr.bf16.mxu0 %v1359_v0  ;;  %934 = vmatprep.mubr.msk.f32.mxu0 %vm1360_vm0, %v1361_v1  ;;  %v394_v3 = vld [vmem:[#allocation5 + $0x8] sm:$0xff]  ;;  %v395_v4 = vld [vmem:[#allocation5 + $0x10] sm:$0xff]  ;;  %v396_v6 = vld [vmem:[#allocation5 + $0x18] sm:$0xff]  ;;  %s848_s20 = sshll.u32 %s1434_s13, 7  ;;  %s391_s29 = scalar_lea.vmem [#allocation10], %s838_s30 }
  0x89   : > { %1031 = vmatprep.subr.bf16.mxu1 %v1359_v0  ;;  %969 = vmatprep.mubr.msk.f32.mxu1 %vm1360_vm0, %v1361_v1  ;;  %v1008_v5 = vpack.c.bf16 %v394_v3, %v393_v2  ;;  %v1011_v7 = vpack.c.bf16 %v396_v6, %v395_v4  ;;  %v397_v8 = vld [vmem:[#allocation5 + $0x20] sm:$0xff]  ;;  %v398_v9 = vld [vmem:[#allocation5 + $0x28] sm:$0xff]  ;;  %v399_v11 = vld [vmem:[#allocation5 + $0x30] sm:$0xff]  ;;  %s1756_s18 = sld [smem:[#allocation17_spill]]  ;;  %s717_s19 = scalar_lea.sflag [#allocation4], %s1611_s9 }
  0x8a   : > { %v1014_v10 = vpack.c.bf16 %v398_v9, %v397_v8  ;;  %v400_v12 = vld [vmem:[#allocation5 + $0x38] sm:$0xff]  ;;  %v401_v14 = vld [vmem:[#allocation5 + $0x40] sm:$0xff]  ;;  %v402_v15 = vld [vmem:[#allocation5 + $0x48] sm:$0xff]  ;;  %s1362_s13 = smov [#allocation10]  }
  0x8b   : > { %1009 = vmatpush3.bf16.msra.mxu0 %v1008_v5  ;;  %v1017_v13 = vpack.c.bf16 %v400_v12, %v399_v11  ;;  %v1020_v16 = vpack.c.bf16 %v402_v15, %v401_v14  ;;  %v403_v17 = vld [vmem:[#allocation5 + $0x50] sm:$0xff]  ;;  %v404_v18 = vld [vmem:[#allocation5 + $0x58] sm:$0xff]  ;;  %v405_v20 = vld [vmem:[#allocation5 + $0x60] sm:$0xff]  ;;  %s1281_s30 = sshll.u32 %s1362_s13, 4  ;;  %s1282_s30 = int_to_ptr.vmem [resolvable:$false] %s1281_s30 }
  0x8c   : > { %1010 = vmatprep.subr.bf16.mxu0 %v1359_v0  ;;  %v1023_v19 = vpack.c.bf16 %v404_v18, %v403_v17  ;;  %v406_v21 = vld [vmem:[#allocation5 + $0x68] sm:$0xff]  ;;  %v407_v23 = vld [vmem:[#allocation5 + $0x70] sm:$0xff]  ;;  %v408_v24 = vld [vmem:[#allocation5 + $0x78] sm:$0xff]  ;;  %s1283_s25 = scalar_lea.vmem %s1282_s30, 256 }
  0x8d   : > { %v1026_v22 = vpack.c.bf16 %v406_v21, %v405_v20  ;;  %v1029_v25 = vpack.c.bf16 %v408_v24, %v407_v23  ;;  %v392_v26 = vld [vmem:[%s1617_s24] sm:$0xff]  ;;  %v523_v27 = vld [vmem:[#allocation7] sm:$0xff]  ;;  %v524_v28 = vld [vmem:[#allocation7 + $0x8] sm:$0xff]  ;;  %s730_s24 = sshll.u32 %s391_s29, 4  ;;  %s1682_s24 = int_to_ptr.vmem [resolvable:$true] %s730_s24 }
  0x8e   : > { %v1032_v29 = vpack.c.bf16 %v524_v28, %v523_v27  ;;  %v525_v30 = vld [vmem:[#allocation7 + $0x10] sm:$0xff]  ;;  %v526_v31 = vld [vmem:[#allocation7 + $0x18] sm:$0xff]  ;;  %v527_v33 = vld [vmem:[#allocation7 + $0x20] sm:$0xff]  ;;  %s1277_s22 = scalar_lea.vmem %s1682_s24, 128  ;;  %p1284_p11 = scmp.lt.s32.totalorder %s1682_s24, %s1282_s30 }
  0x8f   : > { %1012 = vmatpush3.bf16.msra.mxu0 %v1011_v7  ;;  %v1035_v32 = vpack.c.bf16 %v526_v31, %v525_v30  ;;  %v528_v34 = vld [vmem:[#allocation7 + $0x28] sm:$0xff]  ;;  %v529_v36 = vld [vmem:[#allocation7 + $0x30] sm:$0xff]  ;;  %v530_v37 = vld [vmem:[#allocation7 + $0x38] sm:$0xff]  ;;  %v510_v31 = vlaneseq  ;;  %s1680_s23 = scalar_lea.hbm %s1756_s18, %s848_s20  ;;  %p1278_p0 = scmp.ne.s32.totalorder %s1682_s24, %s1277_s22 }
  0x90   : > { %1013 = vmatprep.subr.bf16.mxu0 %v1359_v0  ;;  %1033 = vmatpush3.bf16.msra.mxu1 %v1032_v29  ;;  %v1038_v35 = vpack.c.bf16 %v528_v34, %v527_v33  ;;  %v1041_v38 = vpack.c.bf16 %v530_v37, %v529_v36  ;;  %v531_v39 = vld [vmem:[#allocation7 + $0x40] sm:$0xff]  ;;  %v532_v40 = vld [vmem:[#allocation7 + $0x48] sm:$0xff]  ;;  %v533_v42 = vld [vmem:[#allocation7 + $0x50] sm:$0xff]  ;;  %p1285_p1 = scmp.lt.s32.totalorder %s1283_s25, %s1277_s22 }
  0x91   : > { %1034 = vmatprep.subr.bf16.mxu1 %v1359_v0  ;;  %v1044_v41 = vpack.c.bf16 %v532_v40, %v531_v39  ;;  %v534_v43 = vld [vmem:[#allocation7 + $0x58] sm:$0xff]  ;;  %v535_v45 = vld [vmem:[#allocation7 + $0x60] sm:$0xff]  ;;  %v536_v46 = vld [vmem:[#allocation7 + $0x68] sm:$0xff]  ;;  %p1279_p3 = pnand %p1278_p0, %p1566_p5 }
  0x92   : > { %v1047_v44 = vpack.c.bf16 %v534_v43, %v533_v42  ;;  %v1050_v47 = vpack.c.bf16 %v536_v46, %v535_v45  ;;  %v537_v48 = vld [vmem:[#allocation7 + $0x70] sm:$0xff]  ;;  %v538_v49 = vld [vmem:[#allocation7 + $0x78] sm:$0xff]  ;;  %v619_v51 = vld [vmem:[#allocation8] sm:$0xff]  ;;  %p1286_p2 = por %p1285_p1, %p1284_p11 }
  0x93   : > { %1015 = vmatpush3.bf16.msra.mxu0 %v1014_v10  ;;  %v1053_v50 = vpack.c.bf16 %v538_v49, %v537_v48  ;;  %v620_v52 = vld [vmem:[#allocation8 + $0x8] sm:$0xff]  ;;  %v621_v53 = vld [vmem:[#allocation8 + $0x10] sm:$0xff]  ;;  %v622_v55 = vld [vmem:[#allocation8 + $0x18] sm:$0xff]  ;;  %p1280_p7 = pneg %p1279_p3 }
  0x94   : > { %1016 = vmatprep.subr.bf16.mxu0 %v1359_v0  ;;  %1036 = vmatpush3.bf16.msra.mxu1 %v1035_v32  ;;  %v1056_v54 = vpack.c.bf16 %v620_v52, %v619_v51  ;;  %v1059_v56 = vpack.c.bf16 %v622_v55, %v621_v53  ;;  %v623_v57 = vld [vmem:[#allocation8 + $0x20] sm:$0xff]  ;;  %v624_v58 = vld [vmem:[#allocation8 + $0x28] sm:$0xff]  ;;  %v625_v60 = vld [vmem:[#allocation8 + $0x30] sm:$0xff]  ;;  %v511_v32 = vshrl.u32 %v510_v31, 7 }
  0x95   : > { %1037 = vmatprep.subr.bf16.mxu1 %v1359_v0  ;;  %v1062_v59 = vpack.c.bf16 %v624_v58, %v623_v57  ;;  %v626_v61 = vld [vmem:[#allocation8 + $0x38] sm:$0xff]  ;;  %v627_v63 = vld [vmem:[#allocation8 + $0x40] sm:$0xff]  ;;  %v629_v3 = vld [vmem:[#allocation8 + $0x50] sm:$0xff]  ;;  %p1287_p4 = pnand %p1286_p2, %p1280_p7 }
  0x96   : > { %v1065_v62 = vpack.c.bf16 %v626_v61, %v625_v60  ;;  %v630_v4 = vld [vmem:[#allocation8 + $0x58] sm:$0xff]  ;;  %v631_v6 = vld [vmem:[#allocation8 + $0x60] sm:$0xff]  ;;  %v632_v7 = vld [vmem:[#allocation8 + $0x68] sm:$0xff]  ;;  %v512_v34 = vsub.s32 0, %v511_v32 }
  0x97   : > { %1018 = vmatpush3.bf16.msra.mxu0 %v1017_v13  ;;  %v1071_v5 = vpack.c.bf16 %v630_v4, %v629_v3  ;;  %v1074_v8 = vpack.c.bf16 %v632_v7, %v631_v6  ;;  %v843_v9 = vld [vmem:[%s1725_s2] ss:$0 sm:$0xff]  ;;  %v634_v42 = vld [vmem:[#allocation8 + $0x78] sm:$0xff] }
  0x98   : > { %1019 = vmatprep.subr.bf16.mxu0 %v1359_v0  ;;  %1039 = vmatpush3.bf16.msra.mxu1 %v1038_v35  ;;  %v508_v33 = vld [vmem:[%s1730_s7] sm:$0x1] }
  0x99   : > { %1040 = vmatprep.subr.bf16.mxu1 %v1359_v0 }
  0x9b   : > { %1021 = vmatpush3.bf16.msra.mxu0 %v1020_v16 }
  0x9c   : > { %1022 = vmatprep.subr.bf16.mxu0 %v1359_v0  ;;  %1042 = vmatpush3.bf16.msra.mxu1 %v1041_v38  ;;  %v844_v38 = vld [vmem:[%s1731_s8] ss:$0 sm:$0xff] }
  0x9d   : > { %1043 = vmatprep.subr.bf16.mxu1 %v1359_v0 }
  0x9f   : > { %1024 = vmatpush3.bf16.msra.mxu0 %v1023_v19 }
  0xa0   : > { %1025 = vmatprep.subr.bf16.mxu0 %v1359_v0  ;;  %1045 = vmatpush3.bf16.msra.mxu1 %v1044_v41  ;;  %v633_v41 = vld [vmem:[#allocation8 + $0x70] sm:$0xff] }
  0xa1   : > { %1046 = vmatprep.subr.bf16.mxu1 %v1359_v0  ;;  %v1077_v43 = vpack.c.bf16 %v634_v42, %v633_v41 }
  0xa3   : > { %1027 = vmatpush3.bf16.msra.mxu0 %v1026_v22 }
  0xa4   : > { %1028 = vmatprep.subr.bf16.mxu0 %v1359_v0  ;;  %1048 = vmatpush3.bf16.msra.mxu1 %v1047_v44  ;;  %v845_v44 = vld [vmem:[%s1727_s4] ss:$0 sm:$0xff] }
  0xa5   : > { %1049 = vmatprep.subr.bf16.mxu1 %v1359_v0 }
  0xa7   : > { %1030 = vmatpush3.bf16.msra.mxu0 %v1029_v25 }
  0xa8   : > { %1055 = vmatprep.subr.bf16.mxu0 %v1359_v0  ;;  %1051 = vmatpush3.bf16.msra.mxu1 %v1050_v47 }
  0xa9   : > { %1052 = vmatprep.subr.bf16.mxu1 %v1359_v0 }
  0xaa   : > { %935 = vmatmul.mubr.f32.vlgmr.msra.gmra.mrb[0].mxu0 %v392_v26 }
  0xab   : > { %1004 = vmatprep.mubr.msk.f32.mxu0 %vm1360_vm0, %v1361_v1  ;;  %1057 = vmatpush3.bf16.msra.mxu0 %v1056_v54  ;;  %v628_v1 = vld [vmem:[#allocation8 + $0x48] sm:$0xff] }
  0xac   : > { %1054 = vmatpush3.bf16.msra.mxu1 %v1053_v50  ;;  %1058 = vmatprep.subr.bf16.mxu0 %v1359_v0  ;;  %v1068_v2 = vpack.c.bf16 %v628_v1, %v627_v63  ;;  %v846_v50 = vld [vmem:[%s1729_s6] ss:$0 sm:$0xff] }
  0xaf   : > { %1060 = vmatpush3.bf16.msra.mxu0 %v1059_v56 }
  0xb0   : > { %1061 = vmatprep.subr.bf16.mxu0 %v1359_v0 }
  0xb3   : > { %1063 = vmatpush3.bf16.msra.mxu0 %v1062_v59 }
  0xb4   : > { %1064 = vmatprep.subr.bf16.mxu0 %v1359_v0 }
  0xb7   : > { %1066 = vmatpush3.bf16.msra.mxu0 %v1065_v62 }
  0xb8   : > { %1067 = vmatprep.subr.bf16.mxu0 %v1359_v0 }
  0xbb   : > { %1069 = vmatpush3.bf16.msra.mxu0 %v1068_v2 }
  0xbc   : > { %1070 = vmatprep.subr.bf16.mxu0 %v1359_v0 }
  0xbf   : > { %1072 = vmatpush3.bf16.msra.mxu0 %v1071_v5 }
  0xc0   : > { %1073 = vmatprep.subr.bf16.mxu0 %v1359_v0 }
  0xc3   : > { %1075 = vmatpush3.bf16.msra.mxu0 %v1074_v8 }
  0xc4   : > { %1076 = vmatprep.subr.bf16.mxu0 %v1359_v0 }
  0xc7   : > { %1078 = vmatpush3.bf16.msra.mxu0 %v1077_v43 }
 0x17d   : > { %v482_v10 = vpop.f32.mrb[0].mxu0 }
 0x17e   : > { %v483_v11 = vadd.f32 %v843_v9, %v482_v10  ;;  %v936_v12 = vpop.f32.mrb[1].mxu0 }
 0x180   : > { %vm486_vm1 = vcmp.gt.f32.partialorder %v483_v11, 0.0  ;;  %v487_v13 = vmul.f32 0.01, %v483_v11 }
 0x182   : > { %v488_v14 = vsel %vm486_vm1, %v483_v11, %v487_v13 }
 0x183   : > { %v489_v15 = vrot.slane %v488_v14, 4 }
 0x185   : > { %v490_v16 = vadd.f32 %v489_v15, %v488_v14 }
 0x187   : > { %v491_v17 = vrot.slane %v490_v16, 2 }
 0x189   : > { %v492_v18 = vadd.f32 %v491_v17, %v490_v16 }
 0x18b   : > { %v493_v19 = vrot.slane %v492_v18, 1 }
 0x18d   : > { %v494_v20 = vadd.f32 %v493_v19, %v492_v18 }
 0x18f   : > { %v496_v21 = vmul.f32 0.125, %v494_v20 }
 0x191   : > { %v497_v22 = vsub.f32 %v488_v14, %v496_v21 }
 0x193   : > { %v498_v23 = vmul.f32 %v497_v22, %v497_v22 }
 0x195   : > { %v499_v0 = vrot.slane %v498_v23, 4 }
 0x197   : > { %v500_v24 = vadd.f32 %v499_v0, %v498_v23 }
 0x199   : > { %v501_v25 = vrot.slane %v500_v24, 2 }
 0x19b   : > { %v502_v26 = vadd.f32 %v501_v25, %v500_v24 }
 0x19d   : > { %v503_v27 = vrot.slane %v502_v26, 1 }
 0x19f   : > { %v504_v28 = vadd.f32 %v503_v27, %v502_v26 }
 0x1a1   : > { %v505_v29 = vmul.f32 0.125, %v504_v28 }
 0x1a3   : > { %v506_v30 = vadd.f32 1e-05, %v505_v29 }
 0x1a5   : > { %1161 = vrsqrt.f32 %v506_v30 }
 0x1af   : > { %v1162_v35 = vpop.eup %1161 }
 0x1b0   : > { %v509_v36 = vmul.f32 %v1162_v35, %v508_v33 }
 0x1b2   : > { %v513_v37 = vrot.slane %v509_v36, %v512_v34 }
 0x1b4   : > { %v514_v39 = vmul.f32 %v513_v37, %v497_v22 }
 0x1b6   : > { %v522_v40 = vadd.f32 %v844_v38, %v514_v39 }
 0x1b8   : > { %970 = vmatmul.mubr.f32.vlgmr.msra.gmra.mrb[0].mxu1 %v522_v40 }
 0x28b   : > { %v612_v45 = vpop.f32.mrb[0].mxu1 }
 0x28c   : > { %v613_v46 = vadd.f32 %v845_v44, %v612_v45  ;;  %v971_v47 = vpop.f32.mrb[1].mxu1 }
 0x28e   : > { %vm616_vm2 = vcmp.gt.f32.partialorder %v613_v46, 0.0  ;;  %v617_v48 = vmul.f32 0.01, %v613_v46 }
 0x290   : > { %v618_v49 = vsel %vm616_vm2, %v613_v46, %v617_v48 }
 0x291   : > { %1005 = vmatmul.mubr.f32.vlgmr.msra.gmra.mrb[2].mxu0 %v618_v49 }
 0x364   : > { %v708_v51 = vpop.f32.mrb[2].mxu0 }
 0x365   : > { %v709_v52 = vadd.f32 %v846_v50, %v708_v51  ;;  %v1006_v53 = vpop.f32.mrb[3].mxu0 }
 0x367   : > { %vm712_vm3 = vcmp.gt.f32.partialorder %v709_v52, 0.0  ;;  %v713_v54 = vmul.f32 0.01, %v709_v52 }
 0x369   : > { %v714_v55 = vsel %vm712_vm3, %v709_v52, %v713_v54 }
 0x36a   : > { %715 = vst [vmem:[%s391_s29] sm:$0xff] %v714_v55 }
 0x36b   : > { %1290 = shalt.err (!%p1287_p4)
}
 0x36c   : > { %s1291_s9 = scalar_lea.hbm %s1680_s23, 128  ;;  %s1295_s21 = scalar_lea.hbm %s1756_s18, 512 }
 0x36d   : > { %p1292_p13 = scmp.ne.s32.totalorder %s1680_s23, %s1291_s9  ;;  %p1296_p8 = scmp.lt.u32.totalorder %s1680_s23, %s1756_s18 }
 0x36e   : > { %p1297_p12 = scmp.lt.u32.totalorder %s1295_s21, %s1291_s9  ;;  %p1299_p0 = scmp.lt.u32.totalorder %s1291_s9, %s1680_s23 }
 0x36f   : > { %p1293_p9 = pnand %p1292_p13, %p1566_p5 }
 0x370   : > { %p1298_p6 = por %p1297_p12, %p1296_p8 }
 0x371   : > { %p1294_p10 = pneg %p1293_p9 }
 0x372   : > { %p1300_p3 = por %p1299_p0, %p1298_p6 }
 0x374   : > { %p1301_p7 = pnand %p1300_p3, %p1294_p10 }
 0x376   : > { %1304 = shalt.err (!%p1301_p7)
}
 0x377   : > { %1093 = dma.vmem_to_hbm [thread:$0]  (%p1566_p5), %s1682_s24, 128, %s1680_s23, %s717_s19  }
 0x378 PF: > { %s1757_s15 = sld [smem:[#allocation15_spill]]  ;;  %s1758_s17 = sld [smem:[#allocation16_spill]] }
 0x379   : > { %p1120_p11 = scmp.ge.s32.totalorder %s1351_s12, 2 }
 0x37e   : > { %s742_s22 = sand.u32 1, %s1757_s15   ;;  %p1759_p1 = scmp.ne.s32.totalorder %s1758_s17, 0 }
 0x37f   : > { %s743_s13 = scalar_lea.sflag [#allocation4], %s742_s22 }
 0x380   : > { %p1110_p2 = pnand %p1120_p11, %p1759_p1 }
 0x382   : > { %1334 = dma.done.wait (!%p1110_p2), %s743_s13, 128  }
 0x383   : > { %1336 = vsyncadd (!%p1110_p2), %s743_s13, 4294967168  ;;  %p24_p4 = scmp.ge.s32.totalorder %s1552_s14, 6   ;;  %s1760_s30 = smov %s1343_s10 }
 0x384   : > { %s1761_s10 = smov %s1347_s11  ;;  %s1762_s11 = smov %s1562_s16 }
 0x385   : > { %s1763_s12 = smov %s1552_s14  ;;  %26 = sbr.rel (!%p24_p4) target bundleno = 9 (0x9), region = 113 }
 0x38c   :  { %748 = vsyncpa [#allocation3], 1 }
 0x38d   :  { %750 = vsyncpa [#allocation3 + $0x1], 1 }
 0x38e   :  { %751 = vsyncpa [#allocation6], 1 }
 0x38f   :  { %752 = vsyncpa [#allocation9], 1 }
 0x390   :  { %753 = vsyncpa [#allocation4], 1 }
 0x391   :  { %755 = vsyncpa [#allocation4 + $0x1], 1 }

</bundles_post_ra>
